<compile_context>
chip_gen: v6e
topology: v6e:2x2x1
jax: 0.10.0
libtpu: 0.0.40
codegen_flags: <defaults>
</compile_context>

<pallas_src>
import numpy as np
import jax
import jax.numpy as jnp
from jax.experimental import pallas as pl
from jax.experimental.pallas import tpu as pltpu


def _round_up(x, m):
    return ((x + m - 1) // m) * m


# --------------------------- Pallas kernel bodies --------------------------- #

def _gather_gemm_stats_kernel(g_ref, w_ref, o_ref, sum_ref, sq_ref):
    # One lane-dense MXU GEMM per output-row tile: (TM, K*C_in) @ (K*C_in, C_out)
    # with f32 accumulation; the inverse-conv offset sum is the contraction.
    acc = jnp.dot(g_ref[...], w_ref[...], preferred_element_type=jnp.float32)
    o_ref[...] = acc
    # BatchNorm batch-stat partials for this tile (padded rows are exactly zero
    # and contribute nothing); reduced across tiles by a tiny JAX finalize.
    sum_ref[...] = jnp.sum(acc, axis=0, keepdims=True)[None]
    sq_ref[...] = jnp.sum(acc * acc, axis=0, keepdims=True)[None]


def _bn_relu_kernel(x_ref, scale_ref, shift_ref, o_ref):
    # Fused affine (BatchNorm) + ReLU, fully elementwise.
    o_ref[...] = jnp.maximum(x_ref[...] * scale_ref[...] + shift_ref[...], 0.0)


# ----------------------------- pallas_call wrappers ------------------------- #

def gather_gemm_with_stats(g, w_flat, tm):
    """g: (N_pad, K_pad*C_in) bf16, w_flat: (K_pad*C_in, C_out) bf16.
    Returns conv_out (N_pad, C_out) f32 plus per-tile BN stat partials."""
    n_pad, kc = g.shape
    c_out = w_flat.shape[1]
    grid_m = n_pad // tm
    return pl.pallas_call(
        _gather_gemm_stats_kernel,
        out_shape=(jax.ShapeDtypeStruct((n_pad, c_out), jnp.float32),
                   jax.ShapeDtypeStruct((grid_m, 1, c_out), jnp.float32),
                   jax.ShapeDtypeStruct((grid_m, 1, c_out), jnp.float32)),
        grid=(grid_m,),
        in_specs=[
            pl.BlockSpec((tm, kc), lambda i: (i, 0)),
            pl.BlockSpec((kc, c_out), lambda i: (0, 0)),
        ],
        out_specs=(pl.BlockSpec((tm, c_out), lambda i: (i, 0)),
                   pl.BlockSpec((1, 1, c_out), lambda i: (i, 0, 0)),
                   pl.BlockSpec((1, 1, c_out), lambda i: (i, 0, 0))),
        compiler_params=pltpu.CompilerParams(
            dimension_semantics=("parallel",),
            vmem_limit_bytes=32 * 1024 * 1024),
    )(g, w_flat)


def bn_relu_apply(x, scale_row, shift_row, tb):
    """Tiled affine + ReLU over the conv output (N_pad, C_out)."""
    n_pad, c_out = x.shape
    return pl.pallas_call(
        _bn_relu_kernel,
        out_shape=jax.ShapeDtypeStruct((n_pad, c_out), jnp.float32),
        grid=(n_pad // tb,),
        in_specs=[
            pl.BlockSpec((tb, c_out), lambda i: (i, 0)),
            pl.BlockSpec((1, c_out), lambda i: (0, 0)),
            pl.BlockSpec((1, c_out), lambda i: (0, 0)),
        ],
        out_specs=pl.BlockSpec((tb, c_out), lambda i: (i, 0)),
        compiler_params=pltpu.CompilerParams(
            dimension_semantics=("parallel",),
            vmem_limit_bytes=32 * 1024 * 1024),
    )(x, scale_row, shift_row)


# ------------------------------- forward pass ------------------------------- #

def sparse_conv_transpose_block(features, in_idx, n_out,
                                weights, bias, gamma, beta, eps=1e-5):
    """features: (N_in, C_in) f32.
    in_idx: (N_out, K) int32 rulebook organized per OUTPUT row: output row o
    receives features[in_idx[o, k]] @ weights[k] for every k with
    in_idx[o, k] >= 0 (inverse conv: at most one input per (output, offset)).
    Returns (n_out, C_out) f32 = conv -> train-mode BatchNorm1d -> ReLU."""
    n_in, c_in = features.shape
    k, _, c_out = weights.shape

    # Pad K so the GEMM contraction/lane dim is a multiple of 128 (lane-dense
    # loads); phantom offsets gather the zero row and use zero weight rows.
    k_pad = _round_up(k, 128 // c_in) if 128 % c_in == 0 else k
    kc = k_pad * c_in

    # Output-row tiling: ~1024 rows per tile, minimal padding.
    num_tiles = max(1, -(-n_out // 1024))
    tm = _round_up(-(-n_out // num_tiles), 8)
    n_out_pad = tm * num_tiles

    # Gather table: invalid / phantom / padded entries point at the zero row.
    idx = jnp.where(in_idx >= 0, in_idx, n_in).astype(jnp.int32)
    idx = jnp.pad(idx, ((0, n_out_pad - n_out), (0, k_pad - k)),
                  constant_values=n_in)
    feat_pad = jnp.pad(features.astype(jnp.bfloat16), ((0, 1), (0, 0)))

    # TODO(synk): this rulebook row-gather is the remaining XLA glue; TPU
    # Pallas has no general dynamic row-gather, so G is built with one take.
    g = jnp.take(feat_pad, idx.reshape(-1), axis=0).reshape(n_out_pad, kc)

    w_flat = weights.reshape(k * c_in, c_out).astype(jnp.bfloat16)
    w_flat = jnp.pad(w_flat, ((0, kc - k * c_in), (0, 0)))

    # ---- one output-stationary GEMM + fused BN stat partials (Pallas) ----
    conv_out, part_sum, part_sq = gather_gemm_with_stats(g, w_flat, tm)

    # NOTE: the conv bias is a per-channel constant added before train-mode
    # BatchNorm1d; it is exactly cancelled by the batch-mean subtraction
    # (identical to the PyTorch reference), so it is dropped here.
    del bias

    # ---- tiny BatchNorm finalize (per-channel, training statistics) ----
    ch_sum = jnp.sum(part_sum.reshape(num_tiles, c_out), axis=0)
    ch_sq = jnp.sum(part_sq.reshape(num_tiles, c_out), axis=0)
    inv_n = 1.0 / float(n_out)
    mean = ch_sum * inv_n
    var = jnp.maximum(ch_sq * inv_n - mean * mean, 0.0)   # biased var (train)
    scale = gamma * jax.lax.rsqrt(var + eps)
    shift = beta - mean * scale

    # ---- fused BatchNorm apply + ReLU (Pallas) ----
    y = bn_relu_apply(conv_out, scale.reshape(1, c_out), shift.reshape(1, c_out), tm)
    return y[:n_out]


# ---------------------------------- driver ---------------------------------- #

if __name__ == "__main__":
    key = jax.random.PRNGKey(0)
    k_coords, k_feat, k_w, k_b = jax.random.split(key, 4)

    in_channels, out_channels, kernel_size = 8, 16, 3
    K = kernel_size ** 3
    batch, grid_size = 2, 8
    n_in_nominal = 24

    # ---- synthetic sparse structure (deterministic, host-side) ----
    coords = np.array(jax.random.randint(
        k_coords, (n_in_nominal, 4), 0,
        np.array([batch, grid_size, grid_size, grid_size])))
    coords = np.unique(coords, axis=0)              # (N_in, 4) = (b, z, y, x)
    n_in = coords.shape[0]

    half = kernel_size // 2
    offsets = np.array([(dz, dy, dx)
                        for dz in range(-half, half + 1)
                        for dy in range(-half, half + 1)
                        for dx in range(-half, half + 1)], dtype=np.int64)

    # Output active set: kernel dilation of the input actives (the index set a
    # SparseInverseConv3d restores via its indice_key rulebook).
    tgt = coords[:, None, 1:] + offsets[None, :, :]
    tgt_b = np.broadcast_to(coords[:, None, :1], (n_in, K, 1))
    tgt_full = np.concatenate([tgt_b, tgt], axis=-1).reshape(-1, 4)
    in_bounds = np.all((tgt_full[:, 1:] >= 0) & (tgt_full[:, 1:] < grid_size), axis=1)
    out_coords = np.unique(tgt_full[in_bounds], axis=0)
    n_out = int(out_coords.shape[0])

    def coord_key(c):
        return ((c[:, 0] * grid_size + c[:, 1]) * grid_size + c[:, 2]) * grid_size + c[:, 3]

    in_lut = {int(v): i for i, v in enumerate(coord_key(coords))}

    # Rulebook organized per OUTPUT row: out row o += features[in_idx[o,k]] @ W[k].
    in_idx = np.full((n_out, K), -1, dtype=np.int32)
    for kk in range(K):
        src = out_coords[:, 1:] - offsets[kk]
        ok = np.all((src >= 0) & (src < grid_size), axis=1)
        keys = coord_key(np.concatenate([out_coords[:, :1], src], axis=1))
        for o in range(n_out):
            if ok[o]:
                j = in_lut.get(int(keys[o]))
                if j is not None:
                    in_idx[o, kk] = j

    # ---- deterministic parameters / inputs ----
    features = jax.random.normal(k_feat, (n_in, in_channels), jnp.float32)
    fan_in = in_channels * K
    bound = 1.0 / np.sqrt(fan_in)
    weights = jax.random.uniform(k_w, (K, in_channels, out_channels),
                                 jnp.float32, -bound, bound)
    bias = jax.random.uniform(k_b, (out_channels,), jnp.float32, -bound, bound)
    gamma = jnp.ones((out_channels,), jnp.float32)   # BatchNorm1d default weight
    beta = jnp.zeros((out_channels,), jnp.float32)   # BatchNorm1d default bias

    out = sparse_conv_transpose_block(
        features, jnp.asarray(in_idx), n_out, weights, bias, gamma, beta)
    jax.block_until_ready(out)

    # ---- pure-JAX f32 reference (conv + bias -> train-mode BN -> ReLU) ----
    feat_ref = jnp.pad(features, ((0, 1), (0, 0)))
    idx_ref = jnp.where(jnp.asarray(in_idx) >= 0, jnp.asarray(in_idx), n_in)
    gathered = feat_ref[idx_ref]                               # (n_out, K, C_in)
    conv_ref = jnp.einsum('okc,kcd->od', gathered, weights) + bias
    mu = conv_ref.mean(axis=0)
    vr = conv_ref.var(axis=0)
    ref = jnp.maximum((conv_ref - mu) * jax.lax.rsqrt(vr + 1e-5) * gamma + beta, 0.0)

    assert out.shape == (n_out, out_channels)
    assert bool(jnp.all(out >= 0.0))                 # ReLU post-condition
    assert not np.any(np.isnan(np.asarray(out)))
    assert np.allclose(np.asarray(out), np.asarray(ref), atol=5e-2, rtol=5e-2)
    print("KERNEL_OK")
</pallas_src>

<mosaic_0001>
module attributes {stable_mosaic.version = 11 : i64} {
  func.func @_gather_gemm_stats_kernel(%arg0: i32, %arg1: memref<424x256xbf16, #tpu.memory_space<vmem>>, %arg2: memref<256x16xbf16, #tpu.memory_space<vmem>>, %arg3: memref<424x16xf32, #tpu.memory_space<vmem>>, %arg4: memref<1x1x16xf32, #tpu.memory_space<vmem>>, %arg5: memref<1x1x16xf32, #tpu.memory_space<vmem>>) attributes {dimension_semantics = [#tpu.dimension_semantics<parallel>], iteration_bounds = array<i64: 1>, scalar_prefetch = 0 : i64, scratch_operands = 0 : i64, tpu.core_type = #tpu.core_type<tc>, window_params = [{transform_indices = @transform_0, window_bounds = array<i64: 424, 256>}, {pipeline_mode = #tpu.pipeline_mode<synchronous>, transform_indices = @transform_1, window_bounds = array<i64: 256, 16>}, {transform_indices = @transform_2, window_bounds = array<i64: 424, 16>}, {transform_indices = @transform_3, window_bounds = array<i64: 1, 1, 16>}, {transform_indices = @transform_4, window_bounds = array<i64: 1, 1, 16>}]} {
    %c0 = arith.constant 0 : index
    %c0_0 = arith.constant 0 : index
    %0 = vector.load %arg1[%c0, %c0_0] : memref<424x256xbf16, #tpu.memory_space<vmem>>, vector<424x256xbf16>
    %c0_1 = arith.constant 0 : index
    %c0_2 = arith.constant 0 : index
    %1 = vector.load %arg2[%c0_1, %c0_2] : memref<256x16xbf16, #tpu.memory_space<vmem>>, vector<256x16xbf16>
    %cst = arith.constant dense<0.000000e+00> : vector<424x16xf32>
    %2 = tpu.matmul %0, %1, %cst {dimension_numbers = #tpu.dot_dimension_numbers<[1], [0], [0], [1], [0, 0, 1, 1], [], []>} : vector<424x256xbf16>, vector<256x16xbf16>, vector<424x16xf32> -> vector<424x16xf32>
    %c0_3 = arith.constant 0 : index
    %c0_4 = arith.constant 0 : index
    %3 = vector.load %arg3[%c0_3, %c0_4] : memref<424x16xf32, #tpu.memory_space<vmem>>, vector<424x16xf32>
    tpu.vector_store %arg3[%c0_3, %c0_4], %2 {strides = array<i32>} : memref<424x16xf32, #tpu.memory_space<vmem>>, vector<424x16xf32>,
    %cst_5 = arith.constant dense<0.000000e+00> : vector<16xf32>
    %4 = vector.multi_reduction <add>, %2, %cst_5 [0] : vector<424x16xf32> to vector<16xf32>
    %5 = vector.shape_cast %4 : vector<16xf32> to vector<1x16xf32>
    %6 = vector.shape_cast %5 : vector<1x16xf32> to vector<1x1x16xf32>
    %c0_6 = arith.constant 0 : index
    %c0_7 = arith.constant 0 : index
    %c0_8 = arith.constant 0 : index
    %7 = vector.load %arg4[%c0_6, %c0_7, %c0_8] : memref<1x1x16xf32, #tpu.memory_space<vmem>>, vector<1x1x16xf32>
    tpu.vector_store %arg4[%c0_6, %c0_7, %c0_8], %6 {strides = array<i32>} : memref<1x1x16xf32, #tpu.memory_space<vmem>>, vector<1x1x16xf32>,
    %8 = arith.mulf %2, %2 : vector<424x16xf32>
    %cst_9 = arith.constant dense<0.000000e+00> : vector<16xf32>
    %9 = vector.multi_reduction <add>, %8, %cst_9 [0] : vector<424x16xf32> to vector<16xf32>
    %10 = vector.shape_cast %9 : vector<16xf32> to vector<1x16xf32>
    %11 = vector.shape_cast %10 : vector<1x16xf32> to vector<1x1x16xf32>
    %c0_10 = arith.constant 0 : index
    %c0_11 = arith.constant 0 : index
    %c0_12 = arith.constant 0 : index
    %12 = vector.load %arg5[%c0_10, %c0_11, %c0_12] : memref<1x1x16xf32, #tpu.memory_space<vmem>>, vector<1x1x16xf32>
    tpu.vector_store %arg5[%c0_10, %c0_11, %c0_12], %11 {strides = array<i32>} : memref<1x1x16xf32, #tpu.memory_space<vmem>>, vector<1x1x16xf32>,
    return
  }
  func.func @transform_0(%arg0: i32) -> (i32, i32) {
    %c0_i32 = arith.constant 0 : i32
    %c0_i32_0 = arith.constant 0 : i32
    return %arg0, %c0_i32 : i32, i32
  }
  func.func @transform_1(%arg0: i32) -> (i32, i32) {
    %c0_i32 = arith.constant 0 : i32
    %c0_i32_0 = arith.constant 0 : i32
    %c0_i32_1 = arith.constant 0 : i32
    return %c0_i32, %c0_i32_0 : i32, i32
  }
  func.func @transform_2(%arg0: i32) -> (i32, i32) {
    %c0_i32 = arith.constant 0 : i32
    %c0_i32_0 = arith.constant 0 : i32
    return %arg0, %c0_i32 : i32, i32
  }
  func.func @transform_3(%arg0: i32) -> (i32, i32, i32) {
    %c0_i32 = arith.constant 0 : i32
    %c0_i32_0 = arith.constant 0 : i32
    %c0_i32_1 = arith.constant 0 : i32
    return %arg0, %c0_i32, %c0_i32_0 : i32, i32, i32
  }
  func.func @transform_4(%arg0: i32) -> (i32, i32, i32) {
    %c0_i32 = arith.constant 0 : i32
    %c0_i32_0 = arith.constant 0 : i32
    %c0_i32_1 = arith.constant 0 : i32
    return %arg0, %c0_i32, %c0_i32_0 : i32, i32, i32
  }
}

</mosaic_0001>

<bundles_post_ra>
// kernel: tpu_custom_call.1
= control target key start
LH: loop header
LB: loop body
LE: loop exit
PB: predicated region body
PF: predicated region fallthrough
CT: control target
= control target key end

     0   :  { %10 = vsyncpa [#allocation3], 0  ;;  %s2066_s0 = inlined_call_operand.hbm [shape: bf16[424,256], index: 0, kind: input, shape index: {}]   ;;  %s2067_s1 = inlined_call_operand.vmem [shape: bf16[256,16], index: 1, kind: input, shape index: {}]   ;;  %s2068_s2 = inlined_call_operand.vmem [shape: f32[424,16], index: 2, kind: output, shape index: {0}]   ;;  %s2069_s3 = inlined_call_operand.hbm [shape: f32[1,1,16], index: 3, kind: output, shape index: {1}]   ;;  %s2070_s4 = inlined_call_operand.hbm [shape: f32[1,1,16], index: 4, kind: output, shape index: {2}]  }
   0x1   :  { %11 = vsyncpa [#allocation4], 0 }
   0x2   :  { %12 = vsyncpa [#allocation7], 0  ;;  %s1362_s15 = smov [#allocation2]  }
   0x3   :  { %s18_s16 = sshll.u32 %s1362_s15, 4  ;;  %s19_s16 = int_to_ptr.vmem [resolvable:$true] %s18_s16 }
   0x4   :  { %s1304_s17 = scalar_lea.vmem %s19_s16, 6784  ;;  %p1309_p1 = scmp.lt.s32.totalorder %s19_s16, %s19_s16 }
   0x5   :  { %p1305_p0 = scmp.ne.s32.totalorder %s19_s16, %s1304_s17  ;;  %p1310_p2 = scmp.lt.s32.totalorder %s1304_s17, %s1304_s17 }
   0x7   :  { %p1311_p3 = por %p1310_p2, %p1309_p1 }
   0x9   :  { %p1312_p4 = pnand %p1311_p3, %p1305_p0 }
   0xb   :  { %1315 = shalt.err (!%p1312_p4)
}
   0xc   :  { %s1363_s18 = smov 128   ;;  %s1364_s19 = smov 8  }
   0xd   :  { %24 = dma.hbm_to_vmem [thread:$0]  %s2066_s0, 6784, %s19_s16, [#allocation3], %s1363_s18, %s1363_s18, %s1364_s19  }
   0xe   :  { %1356 = dma.done.wait [#allocation3], 6784  }
   0xf   :  { %1357 = vsyncadd [#allocation3], 4294960512  ;;  %v1365_v0 = vmov 0   ;;  %v1200_v1 = vld [vmem:[%s2067_s1 + $0x38] sm:$0xff]   ;;  %v1201_v2 = vld [vmem:[%s2067_s1 + $0x30] sm:$0xff]   ;;  %vm727_vm0 = vcmask 130048  }
  0x10   :  { %479 = vmatprep.subr.bf16.mxu0 %v1365_v0  ;;  %1162 = vmatprep.subr.bf16.mxu1 %v1365_v0  ;;  %v1202_v3 = vld [vmem:[%s2067_s1 + $0x28] sm:$0xff]   ;;  %v1203_v4 = vld [vmem:[%s2067_s1 + $0x20] sm:$0xff]   ;;  %v1204_v5 = vld [vmem:[%s2067_s1 + $0x18] sm:$0xff]   ;;  %vm892_vm1 = vcmask 122880   ;;  %s1367_s22 = smov [#allocation6]  }
  0x11   :  { %480 = vmatpush1.bf16.msra.mxu0 %v1200_v1  ;;  %1178 = vmatpush1.bf16.msra.mxu1 %v1200_v1  ;;  %v1218_v6 = vld [vmem:[#allocation2 + $0x4] ss:$8 sps:$4 sm:$0xff]   ;;  %v1205_v7 = vld [vmem:[%s2067_s1 + $0x10] sm:$0xff]   ;;  %v1208_v11 = vld [vmem:[%s2067_s1 + $0x78] sm:$0xff]   ;;  %s1077_s23 = sshll.u32 %s1367_s22, 4  ;;  %s1078_s23 = int_to_ptr.vmem [resolvable:$true] %s1077_s23 }
  0x12   :  { %481 = vmatprep.subr.bf16.mxu0 %v1365_v0  ;;  %1163 = vmatprep.subr.bf16.mxu1 %v1365_v0  ;;  %v1206_v8 = vld [vmem:[%s2067_s1 + $0x8] sm:$0xff]   ;;  %v1207_v9 = vld [vmem:[%s2067_s1] sm:$0xff]   ;;  %v1209_v12 = vld [vmem:[%s2067_s1 + $0x70] sm:$0xff]  }
  0x13   :  { %511 = vmatprep.mubr.bf16.mxu0 %v1218_v6  ;;  %v1241_v10 = vld [vmem:[#allocation2 + $0xe4] ss:$8 sps:$4 sm:$0xff]   ;;  %v1212_v15 = vld [vmem:[%s2067_s1 + $0x58] sm:$0xff]   ;;  %v1213_v16 = vld [vmem:[%s2067_s1 + $0x50] sm:$0xff]  }
  0x14   :  { %623 = vmatprep.mubr.bf16.mxu1 %v1241_v10  ;;  %v1210_v13 = vld [vmem:[%s2067_s1 + $0x68] sm:$0xff]   ;;  %v1211_v14 = vld [vmem:[%s2067_s1 + $0x60] sm:$0xff]   ;;  %v1219_v21 = vld [vmem:[#allocation2 + $0x14] ss:$8 sps:$4 sm:$0xff]  }
  0x15   :  { %482 = vmatpush1.bf16.msra.mxu0 %v1201_v2  ;;  %1179 = vmatpush1.bf16.msra.mxu1 %v1201_v2  ;;  %v1214_v17 = vld [vmem:[%s2067_s1 + $0x48] sm:$0xff]   ;;  %v1215_v18 = vld [vmem:[%s2067_s1 + $0x40] sm:$0xff]   ;;  %v1245_v22 = vld [vmem:[#allocation2 + $0xf4] ss:$8 sps:$4 sm:$0xff]  }
  0x16   :  { %483 = vmatprep.subr.bf16.mxu0 %v1365_v0  ;;  %1164 = vmatprep.subr.bf16.mxu1 %v1365_v0  ;;  %v1216_v19 = vld [vmem:[#allocation2] ss:$8 sps:$4 sm:$0xff]   ;;  %v1221_v23 = vld [vmem:[#allocation2 + $0x10] ss:$8 sps:$4 sm:$0xff]   ;;  %v1222_v25 = vld [vmem:[#allocation2 + $0x24] ss:$8 sps:$4 sm:$0xff]  }
  0x17   :  { %v1239_v20 = vld [vmem:[#allocation2 + $0xe0] ss:$8 sps:$4 sm:$0xff]   ;;  %v1248_v24 = vld [vmem:[#allocation2 + $0xf0] ss:$8 sps:$4 sm:$0xff]   ;;  %v1251_v26 = vld [vmem:[#allocation2 + $0x104] ss:$8 sps:$4 sm:$0xff]  }
  0x18   :  { %v1224_v27 = vld [vmem:[#allocation2 + $0x20] ss:$8 sps:$4 sm:$0xff]   ;;  %v1225_v29 = vld [vmem:[#allocation2 + $0x34] ss:$8 sps:$4 sm:$0xff]   ;;  %v1227_v31 = vld [vmem:[#allocation2 + $0x30] ss:$8 sps:$4 sm:$0xff]  }
  0x19   :  { %484 = vmatpush1.bf16.msra.mxu0 %v1202_v3  ;;  %1180 = vmatpush1.bf16.msra.mxu1 %v1202_v3  ;;  %v1254_v28 = vld [vmem:[#allocation2 + $0x100] ss:$8 sps:$4 sm:$0xff]   ;;  %v1257_v30 = vld [vmem:[#allocation2 + $0x114] ss:$8 sps:$4 sm:$0xff]   ;;  %v1260_v32 = vld [vmem:[#allocation2 + $0x110] ss:$8 sps:$4 sm:$0xff]  }
  0x1a   :  { %485 = vmatprep.subr.bf16.mxu0 %v1365_v0  ;;  %1165 = vmatprep.subr.bf16.mxu1 %v1365_v0  ;;  %v1228_v33 = vld [vmem:[#allocation2 + $0x44] ss:$8 sps:$4 sm:$0xff]   ;;  %v1230_v35 = vld [vmem:[#allocation2 + $0x40] ss:$8 sps:$4 sm:$0xff]   ;;  %v1231_v37 = vld [vmem:[#allocation2 + $0x54] ss:$8 sps:$4 sm:$0xff]  }
  0x1b   :  { %v1263_v34 = vld [vmem:[#allocation2 + $0x124] ss:$8 sps:$4 sm:$0xff]   ;;  %v1266_v36 = vld [vmem:[#allocation2 + $0x120] ss:$8 sps:$4 sm:$0xff]   ;;  %v1269_v38 = vld [vmem:[#allocation2 + $0x134] ss:$8 sps:$4 sm:$0xff]  }
  0x1c   :  { %v1233_v39 = vld [vmem:[#allocation2 + $0x50] ss:$8 sps:$4 sm:$0xff]   ;;  %v1234_v41 = vld [vmem:[#allocation2 + $0x64] ss:$8 sps:$4 sm:$0xff]   ;;  %v1236_v43 = vld [vmem:[#allocation2 + $0x60] ss:$8 sps:$4 sm:$0xff]  }
  0x1d   :  { %486 = vmatpush1.bf16.msra.mxu0 %v1203_v4  ;;  %1181 = vmatpush1.bf16.msra.mxu1 %v1203_v4  ;;  %v1272_v40 = vld [vmem:[#allocation2 + $0x130] ss:$8 sps:$4 sm:$0xff]   ;;  %v1275_v42 = vld [vmem:[#allocation2 + $0x144] ss:$8 sps:$4 sm:$0xff]   ;;  %v1278_v44 = vld [vmem:[#allocation2 + $0x140] ss:$8 sps:$4 sm:$0xff]  }
  0x1e   :  { %487 = vmatprep.subr.bf16.mxu0 %v1365_v0  ;;  %1166 = vmatprep.subr.bf16.mxu1 %v1365_v0  ;;  %v1237_v45 = vld [vmem:[#allocation2 + $0x74] ss:$8 sps:$4 sm:$0xff]   ;;  %v1242_v47 = vld [vmem:[#allocation2 + $0x70] ss:$8 sps:$4 sm:$0xff]   ;;  %v1243_v49 = vld [vmem:[#allocation2 + $0x84] ss:$8 sps:$4 sm:$0xff]  }
  0x1f   :  { %v1279_v46 = vld [vmem:[#allocation2 + $0x154] ss:$8 sps:$4 sm:$0xff]   ;;  %v1281_v48 = vld [vmem:[#allocation2 + $0x150] ss:$8 sps:$4 sm:$0xff]   ;;  %v1282_v50 = vld [vmem:[#allocation2 + $0x164] ss:$8 sps:$4 sm:$0xff]  }
  0x20   :  { %v1247_v51 = vld [vmem:[#allocation2 + $0x80] ss:$8 sps:$4 sm:$0xff]   ;;  %v1249_v53 = vld [vmem:[#allocation2 + $0x94] ss:$8 sps:$4 sm:$0xff]   ;;  %v1253_v55 = vld [vmem:[#allocation2 + $0x90] ss:$8 sps:$4 sm:$0xff]  }
  0x21   :  { %488 = vmatpush1.bf16.msra.mxu0 %v1204_v5  ;;  %1182 = vmatpush1.bf16.msra.mxu1 %v1204_v5  ;;  %v1284_v52 = vld [vmem:[#allocation2 + $0x160] ss:$8 sps:$4 sm:$0xff]   ;;  %v1285_v54 = vld [vmem:[#allocation2 + $0x174] ss:$8 sps:$4 sm:$0xff]   ;;  %v1287_v56 = vld [vmem:[#allocation2 + $0x170] ss:$8 sps:$4 sm:$0xff]  }
  0x22   :  { %489 = vmatprep.subr.bf16.mxu0 %v1365_v0  ;;  %1167 = vmatprep.subr.bf16.mxu1 %v1365_v0  ;;  %v1255_v57 = vld [vmem:[#allocation2 + $0xa4] ss:$8 sps:$4 sm:$0xff]   ;;  %v1259_v59 = vld [vmem:[#allocation2 + $0xa0] ss:$8 sps:$4 sm:$0xff]   ;;  %v1261_v61 = vld [vmem:[#allocation2 + $0xb4] ss:$8 sps:$4 sm:$0xff]  }
  0x23   :  { %v1288_v58 = vld [vmem:[#allocation2 + $0x184] ss:$8 sps:$4 sm:$0xff]   ;;  %v1290_v60 = vld [vmem:[#allocation2 + $0x180] ss:$8 sps:$4 sm:$0xff]   ;;  %v1291_v62 = vld [vmem:[#allocation2 + $0x194] ss:$8 sps:$4 sm:$0xff]  }
  0x24   :  { %v83_v63 = vld [vmem:[#allocation2 + $0x1a0] sm:$0xff]  ;;  %v1293_v1 = vld [vmem:[#allocation2 + $0x190] ss:$8 sps:$4 sm:$0xff]   ;;  %v1273_v6 = vld [vmem:[#allocation2 + $0xd4] ss:$8 sps:$4 sm:$0xff]  }
  0x25   :  { %490 = vmatpush1.bf16.msra.mxu0 %v1205_v7  ;;  %1183 = vmatpush1.bf16.msra.mxu1 %v1205_v7  ;;  %v1267_v2 = vld [vmem:[#allocation2 + $0xc4] ss:$8 sps:$4 sm:$0xff]   ;;  %v1145_v3 = vcombine.high %v83_v63, %v83_v63  ;;  %v1271_v4 = vld [vmem:[#allocation2 + $0xc0] ss:$8 sps:$4 sm:$0xff]   ;;  %v1144_v5 = vcombine.low %v83_v63, %v83_v63  ;;  %v1277_v7 = vld [vmem:[#allocation2 + $0xd0] ss:$8 sps:$4 sm:$0xff]  }
  0x26   :  { %491 = vmatprep.subr.bf16.mxu0 %v1365_v0  ;;  %1168 = vmatprep.subr.bf16.mxu1 %v1365_v0 }
  0x29   :  { %492 = vmatpush1.bf16.msra.mxu0 %v1206_v8  ;;  %1184 = vmatpush1.bf16.msra.mxu1 %v1206_v8 }
  0x2a   :  { %493 = vmatprep.subr.bf16.mxu0 %v1365_v0  ;;  %1169 = vmatprep.subr.bf16.mxu1 %v1365_v0 }
  0x2d   :  { %494 = vmatpush1.bf16.msra.mxu0 %v1207_v9  ;;  %1185 = vmatpush1.bf16.msra.mxu1 %v1207_v9 }
  0x2e   :  { %495 = vmatprep.subr.bf16.mxu0 %v1365_v0  ;;  %1170 = vmatprep.subr.bf16.mxu1 %v1365_v0 }
  0x31   :  { %496 = vmatpush2.bf16.msra.mxu0 %v1208_v11  ;;  %1186 = vmatpush2.bf16.msra.mxu1 %v1208_v11 }
  0x32   :  { %497 = vmatprep.subr.bf16.mxu0 %v1365_v0  ;;  %1171 = vmatprep.subr.bf16.mxu1 %v1365_v0 }
  0x35   :  { %498 = vmatpush2.bf16.msra.mxu0 %v1209_v12  ;;  %1187 = vmatpush2.bf16.msra.mxu1 %v1209_v12 }
  0x36   :  { %499 = vmatprep.subr.bf16.mxu0 %v1365_v0  ;;  %1172 = vmatprep.subr.bf16.mxu1 %v1365_v0 }
  0x39   :  { %500 = vmatpush2.bf16.msra.mxu0 %v1210_v13  ;;  %1188 = vmatpush2.bf16.msra.mxu1 %v1210_v13 }
  0x3a   :  { %501 = vmatprep.subr.bf16.mxu0 %v1365_v0  ;;  %1173 = vmatprep.subr.bf16.mxu1 %v1365_v0 }
  0x3d   :  { %502 = vmatpush2.bf16.msra.mxu0 %v1211_v14  ;;  %1189 = vmatpush2.bf16.msra.mxu1 %v1211_v14 }
  0x3e   :  { %503 = vmatprep.subr.bf16.mxu0 %v1365_v0  ;;  %1174 = vmatprep.subr.bf16.mxu1 %v1365_v0 }
  0x41   :  { %504 = vmatpush2.bf16.msra.mxu0 %v1212_v15  ;;  %1190 = vmatpush2.bf16.msra.mxu1 %v1212_v15 }
  0x42   :  { %505 = vmatprep.subr.bf16.mxu0 %v1365_v0  ;;  %1175 = vmatprep.subr.bf16.mxu1 %v1365_v0 }
  0x45   :  { %506 = vmatpush2.bf16.msra.mxu0 %v1213_v16  ;;  %1191 = vmatpush2.bf16.msra.mxu1 %v1213_v16 }
  0x46   :  { %507 = vmatprep.subr.bf16.mxu0 %v1365_v0  ;;  %1176 = vmatprep.subr.bf16.mxu1 %v1365_v0 }
  0x49   :  { %508 = vmatpush2.bf16.msra.mxu0 %v1214_v17  ;;  %1192 = vmatpush2.bf16.msra.mxu1 %v1214_v17 }
  0x4a   :  { %509 = vmatprep.subr.bf16.mxu0 %v1365_v0  ;;  %1177 = vmatprep.subr.bf16.mxu1 %v1365_v0  ;;  %v1265_v0 = vld [vmem:[#allocation2 + $0xb0] ss:$8 sps:$4 sm:$0xff]  }
  0x4d   :  { %510 = vmatpush2.bf16.msra.mxu0 %v1215_v18  ;;  %1193 = vmatpush2.bf16.msra.mxu1 %v1215_v18 }
  0x50   :  { %512 = vmatmul.mubr.bf16.vlgmr.msra.gmra.mxu0 %v1216_v19  ;;  %624 = vmatmul.mubr.bf16.vlgmr.msra.gmra.mxu1 %v1239_v20 }
  0x51   :  { %519 = vmatprep.mubr.bf16.mxu0 %v1219_v21  ;;  %631 = vmatprep.mubr.bf16.mxu1 %v1245_v22 }
  0x58   :  { %520 = vmatmul.mubr.bf16.gmra.mxu0 %v1221_v23  ;;  %632 = vmatmul.mubr.bf16.gmra.mxu1 %v1248_v24 }
  0x59   :  { %527 = vmatprep.mubr.bf16.mxu0 %v1222_v25  ;;  %639 = vmatprep.mubr.bf16.mxu1 %v1251_v26 }
  0x60   :  { %528 = vmatmul.mubr.bf16.gmra.mxu0 %v1224_v27  ;;  %640 = vmatmul.mubr.bf16.gmra.mxu1 %v1254_v28 }
  0x61   :  { %535 = vmatprep.mubr.bf16.mxu0 %v1225_v29  ;;  %647 = vmatprep.mubr.bf16.mxu1 %v1257_v30 }
  0x68   :  { %536 = vmatmul.mubr.bf16.gmra.mxu0 %v1227_v31  ;;  %648 = vmatmul.mubr.bf16.gmra.mxu1 %v1260_v32 }
  0x69   :  { %543 = vmatprep.mubr.bf16.mxu0 %v1228_v33  ;;  %655 = vmatprep.mubr.bf16.mxu1 %v1263_v34 }
  0x70   :  { %544 = vmatmul.mubr.bf16.gmra.mxu0 %v1230_v35  ;;  %656 = vmatmul.mubr.bf16.gmra.mxu1 %v1266_v36 }
  0x71   :  { %551 = vmatprep.mubr.bf16.mxu0 %v1231_v37  ;;  %663 = vmatprep.mubr.bf16.mxu1 %v1269_v38 }
  0x78   :  { %552 = vmatmul.mubr.bf16.gmra.mxu0 %v1233_v39  ;;  %664 = vmatmul.mubr.bf16.gmra.mxu1 %v1272_v40 }
  0x79   :  { %559 = vmatprep.mubr.bf16.mxu0 %v1234_v41  ;;  %671 = vmatprep.mubr.bf16.mxu1 %v1275_v42 }
  0x80   :  { %560 = vmatmul.mubr.bf16.gmra.mxu0 %v1236_v43  ;;  %672 = vmatmul.mubr.bf16.gmra.mxu1 %v1278_v44 }
  0x81   :  { %567 = vmatprep.mubr.bf16.mxu0 %v1237_v45  ;;  %679 = vmatprep.mubr.bf16.mxu1 %v1279_v46 }
  0x88   :  { %568 = vmatmul.mubr.bf16.gmra.mxu0 %v1242_v47  ;;  %680 = vmatmul.mubr.bf16.gmra.mxu1 %v1281_v48 }
  0x89   :  { %575 = vmatprep.mubr.bf16.mxu0 %v1243_v49  ;;  %687 = vmatprep.mubr.bf16.mxu1 %v1282_v50 }
  0x90   :  { %576 = vmatmul.mubr.bf16.gmra.mxu0 %v1247_v51  ;;  %688 = vmatmul.mubr.bf16.gmra.mxu1 %v1284_v52 }
  0x91   :  { %583 = vmatprep.mubr.bf16.mxu0 %v1249_v53  ;;  %695 = vmatprep.mubr.bf16.mxu1 %v1285_v54 }
  0x98   :  { %584 = vmatmul.mubr.bf16.gmra.mxu0 %v1253_v55  ;;  %696 = vmatmul.mubr.bf16.gmra.mxu1 %v1287_v56 }
  0x99   :  { %591 = vmatprep.mubr.bf16.mxu0 %v1255_v57  ;;  %703 = vmatprep.mubr.bf16.mxu1 %v1288_v58 }
  0xa0   :  { %592 = vmatmul.mubr.bf16.gmra.mxu0 %v1259_v59  ;;  %704 = vmatmul.mubr.bf16.gmra.mxu1 %v1290_v60 }
  0xa1   :  { %599 = vmatprep.mubr.bf16.mxu0 %v1261_v61  ;;  %711 = vmatprep.mubr.bf16.mxu1 %v1291_v62 }
  0xa8   :  { %600 = vmatmul.mubr.bf16.gmra.mxu0 %v1265_v0  ;;  %712 = vmatmul.mubr.bf16.gmra.mxu1 %v1293_v1 }
  0xa9   :  { %607 = vmatprep.mubr.bf16.mxu0 %v1267_v2  ;;  %719 = vmatprep.mubr.bf16.mxu1 %v1145_v3 }
  0xb0   :  { %608 = vmatmul.mubr.bf16.gmra.mxu0 %v1271_v4  ;;  %720 = vmatmul.mubr.bf16.gmra.mxu1 %v1144_v5 }
  0xb1   :  { %615 = vmatprep.mubr.bf16.mxu0 %v1273_v6 }
  0xb8   :  { %616 = vmatmul.mubr.bf16.gmra.mxu0 %v1277_v7 }
 0x110   :  { %v1476_v8 = vpop.f32.mrf.mxu0  ;;  %v1478_v9 = vpop.f32.mrf.mxu1 }
 0x111   :  { %728 = vst.msk [vmem:[%s2068_s2] sm:$0xff] %vm727_vm0, %v1476_v8  ;;  %756 = vst.msk [vmem:[%s2068_s2 + $0xe0] sm:$0xff] %vm727_vm0, %v1478_v9  ;;  %v894_v1 = vmul.f32 %v1476_v8, %v1476_v8  ;;  %v781_v6 = vsel %vm727_vm0, %v1476_v8, 0.0 }
 0x112   :  { %v515_v10 = vpop.f32.mrf.mxu0  ;;  %v627_v11 = vpop.f32.mrf.mxu1 }
 0x114   :  { %v1490_v12 = vpop.f32.mrf.mxu0  ;;  %v1492_v13 = vpop.f32.mrf.mxu1 }
 0x115   :  { %729 = vst.msk [vmem:[%s2068_s2 + $0x8] sm:$0xff] %vm727_vm0, %v1490_v12  ;;  %757 = vst.msk [vmem:[%s2068_s2 + $0xe8] sm:$0xff] %vm727_vm0, %v1492_v13  ;;  %v895_v62 = vmul.f32 %v1490_v12, %v1490_v12  ;;  %v782_v2 = vsel %vm727_vm0, %v1490_v12, 0.0 }
 0x116   :  { %v518_v14 = vpop.f32.mrf.mxu0  ;;  %v630_v15 = vpop.f32.mrf.mxu1  ;;  %v783_v8 = vadd.f32 %v782_v2, %v781_v6 }
 0x117   :  { %v948_v7 = vsel %vm727_vm0, %v895_v62, 0.0  ;;  %v947_v15 = vsel %vm727_vm0, %v894_v1, 0.0 }
 0x118   :  { %v1504_v16 = vpop.f32.mrf.mxu0  ;;  %v1506_v17 = vpop.f32.mrf.mxu1 }
 0x119   :  { %730 = vst.msk [vmem:[%s2068_s2 + $0x10] sm:$0xff] %vm727_vm0, %v1504_v16  ;;  %758 = vst.msk [vmem:[%s2068_s2 + $0xf0] sm:$0xff] %vm727_vm0, %v1506_v17  ;;  %v896_v3 = vmul.f32 %v1504_v16, %v1504_v16  ;;  %v784_v10 = vsel %vm727_vm0, %v1504_v16, 0.0 }
 0x11a   :  { %v523_v18 = vpop.f32.mrf.mxu0  ;;  %v635_v19 = vpop.f32.mrf.mxu1 }
 0x11b   :  { %v950_v16 = vsel %vm727_vm0, %v896_v3, 0.0 }
 0x11c   :  { %v1518_v20 = vpop.f32.mrf.mxu0  ;;  %v1520_v21 = vpop.f32.mrf.mxu1 }
 0x11d   :  { %731 = vst.msk [vmem:[%s2068_s2 + $0x18] sm:$0xff] %vm727_vm0, %v1518_v20  ;;  %759 = vst.msk [vmem:[%s2068_s2 + $0xf8] sm:$0xff] %vm727_vm0, %v1520_v21  ;;  %v897_v11 = vmul.f32 %v1518_v20, %v1518_v20  ;;  %v786_v18 = vsel %vm727_vm0, %v1518_v20, 0.0 }
 0x11e   :  { %v526_v22 = vpop.f32.mrf.mxu0  ;;  %v638_v23 = vpop.f32.mrf.mxu1 }
 0x11f   :  { %v949_v22 = vadd.f32 %v948_v7, %v947_v15  ;;  %v785_v23 = vadd.f32 %v784_v10, %v783_v8 }
 0x120   :  { %v1532_v24 = vpop.f32.mrf.mxu0  ;;  %v1534_v25 = vpop.f32.mrf.mxu1 }
 0x121   :  { %732 = vst.msk [vmem:[%s2068_s2 + $0x20] sm:$0xff] %vm727_vm0, %v1532_v24  ;;  %760 = vst.msk [vmem:[%s2068_s2 + $0x100] sm:$0xff] %vm727_vm0, %v1534_v25  ;;  %v898_v19 = vmul.f32 %v1532_v24, %v1532_v24  ;;  %v951_v20 = vadd.f32 %v950_v16, %v949_v22 }
 0x122   :  { %v531_v26 = vpop.f32.mrf.mxu0  ;;  %v643_v27 = vpop.f32.mrf.mxu1 }
 0x124   :  { %v1546_v28 = vpop.f32.mrf.mxu0  ;;  %v1548_v29 = vpop.f32.mrf.mxu1 }
 0x125   :  { %733 = vst.msk [vmem:[%s2068_s2 + $0x28] sm:$0xff] %vm727_vm0, %v1546_v28  ;;  %761 = vst.msk [vmem:[%s2068_s2 + $0x108] sm:$0xff] %vm727_vm0, %v1548_v29 }
 0x126   :  { %v534_v30 = vpop.f32.mrf.mxu0  ;;  %v646_v31 = vpop.f32.mrf.mxu1 }
 0x127   :  { %v952_v30 = vsel %vm727_vm0, %v897_v11, 0.0  ;;  %v788_v31 = vsel %vm727_vm0, %v1532_v24, 0.0  ;;  %v954_v24 = vsel %vm727_vm0, %v898_v19, 0.0 }
 0x128   :  { %v1560_v32 = vpop.f32.mrf.mxu0  ;;  %v1562_v33 = vpop.f32.mrf.mxu1 }
 0x129   :  { %734 = vst.msk [vmem:[%s2068_s2 + $0x30] sm:$0xff] %vm727_vm0, %v1560_v32  ;;  %762 = vst.msk [vmem:[%s2068_s2 + $0x110] sm:$0xff] %vm727_vm0, %v1562_v33 }
 0x12a   :  { %v539_v34 = vpop.f32.mrf.mxu0  ;;  %v651_v35 = vpop.f32.mrf.mxu1 }
 0x12b   :  { %v899_v34 = vmul.f32 %v1546_v28, %v1546_v28  ;;  %v787_v35 = vadd.f32 %v786_v18, %v785_v23 }
 0x12c   :  { %v1574_v36 = vpop.f32.mrf.mxu0  ;;  %v1576_v37 = vpop.f32.mrf.mxu1 }
 0x12d   :  { %735 = vst.msk [vmem:[%s2068_s2 + $0x38] sm:$0xff] %vm727_vm0, %v1574_v36  ;;  %763 = vst.msk [vmem:[%s2068_s2 + $0x118] sm:$0xff] %vm727_vm0, %v1576_v37 }
 0x12e   :  { %v542_v38 = vpop.f32.mrf.mxu0  ;;  %v654_v39 = vpop.f32.mrf.mxu1 }
 0x130   :  { %v1588_v40 = vpop.f32.mrf.mxu0  ;;  %v1590_v41 = vpop.f32.mrf.mxu1 }
 0x131   :  { %736 = vst.msk [vmem:[%s2068_s2 + $0x40] sm:$0xff] %vm727_vm0, %v1588_v40  ;;  %764 = vst.msk [vmem:[%s2068_s2 + $0x120] sm:$0xff] %vm727_vm0, %v1590_v41  ;;  %v902_v1 = vmul.f32 %v1588_v40, %v1588_v40  ;;  %v796_v11 = vsel %vm727_vm0, %v1588_v40, 0.0 }
 0x132   :  { %v547_v42 = vpop.f32.mrf.mxu0  ;;  %v659_v43 = vpop.f32.mrf.mxu1 }
 0x133   :  { %v790_v42 = vsel %vm727_vm0, %v1546_v28, 0.0  ;;  %v900_v43 = vmul.f32 %v1560_v32, %v1560_v32  ;;  %v962_v40 = vsel %vm727_vm0, %v902_v1, 0.0 }
 0x134   :  { %v1602_v44 = vpop.f32.mrf.mxu0  ;;  %v1604_v45 = vpop.f32.mrf.mxu1 }
 0x135   :  { %737 = vst.msk [vmem:[%s2068_s2 + $0x48] sm:$0xff] %vm727_vm0, %v1602_v44  ;;  %765 = vst.msk [vmem:[%s2068_s2 + $0x128] sm:$0xff] %vm727_vm0, %v1604_v45  ;;  %v903_v8 = vmul.f32 %v1602_v44, %v1602_v44  ;;  %v798_v16 = vsel %vm727_vm0, %v1602_v44, 0.0 }
 0x136   :  { %v550_v46 = vpop.f32.mrf.mxu0  ;;  %v662_v47 = vpop.f32.mrf.mxu1 }
 0x137   :  { %v953_v46 = vadd.f32 %v952_v30, %v951_v20  ;;  %v789_v47 = vadd.f32 %v788_v31, %v787_v35  ;;  %v964_v31 = vsel %vm727_vm0, %v903_v8, 0.0 }
 0x138   :  { %v1616_v48 = vpop.f32.mrf.mxu0  ;;  %v1618_v49 = vpop.f32.mrf.mxu1 }
 0x139   :  { %738 = vst.msk [vmem:[%s2068_s2 + $0x50] sm:$0xff] %vm727_vm0, %v1616_v48  ;;  %766 = vst.msk [vmem:[%s2068_s2 + $0x130] sm:$0xff] %vm727_vm0, %v1618_v49  ;;  %v955_v28 = vadd.f32 %v954_v24, %v953_v46  ;;  %v904_v18 = vmul.f32 %v1616_v48, %v1616_v48 }
 0x13a   :  { %v555_v50 = vpop.f32.mrf.mxu0  ;;  %v667_v51 = vpop.f32.mrf.mxu1 }
 0x13c   :  { %v1630_v52 = vpop.f32.mrf.mxu0  ;;  %v1632_v53 = vpop.f32.mrf.mxu1 }
 0x13d   :  { %739 = vst.msk [vmem:[%s2068_s2 + $0x58] sm:$0xff] %vm727_vm0, %v1630_v52  ;;  %767 = vst.msk [vmem:[%s2068_s2 + $0x138] sm:$0xff] %vm727_vm0, %v1632_v53  ;;  %v905_v20 = vmul.f32 %v1630_v52, %v1630_v52  ;;  %v802_v24 = vsel %vm727_vm0, %v1630_v52, 0.0 }
 0x13e   :  { %v558_v54 = vpop.f32.mrf.mxu0  ;;  %v670_v55 = vpop.f32.mrf.mxu1 }
 0x13f   :  { %v956_v54 = vsel %vm727_vm0, %v899_v34, 0.0  ;;  %v792_v55 = vsel %vm727_vm0, %v1560_v32, 0.0  ;;  %v958_v32 = vsel %vm727_vm0, %v900_v43, 0.0  ;;  %v800_v34 = vsel %vm727_vm0, %v1616_v48, 0.0 }
 0x140   :  { %v1644_v56 = vpop.f32.mrf.mxu0  ;;  %v1646_v57 = vpop.f32.mrf.mxu1  ;;  %v957_v2 = vadd.f32 %v956_v54, %v955_v28  ;;  %v966_v48 = vsel %vm727_vm0, %v904_v18, 0.0 }
 0x141   :  { %740 = vst.msk [vmem:[%s2068_s2 + $0x60] sm:$0xff] %vm727_vm0, %v1644_v56  ;;  %768 = vst.msk [vmem:[%s2068_s2 + $0x140] sm:$0xff] %vm727_vm0, %v1646_v57 }
 0x142   :  { %v563_v58 = vpop.f32.mrf.mxu0  ;;  %v675_v59 = vpop.f32.mrf.mxu1 }
 0x143   :  { %v901_v58 = vmul.f32 %v1574_v36, %v1574_v36  ;;  %v791_v59 = vadd.f32 %v790_v42, %v789_v47  ;;  %v906_v42 = vmul.f32 %v1644_v56, %v1644_v56 }
 0x144   :  { %v1658_v60 = vpop.f32.mrf.mxu0  ;;  %v1660_v61 = vpop.f32.mrf.mxu1 }
 0x145   :  { %741 = vst.msk [vmem:[%s2068_s2 + $0x68] sm:$0xff] %vm727_vm0, %v1658_v60  ;;  %769 = vst.msk [vmem:[%s2068_s2 + $0x148] sm:$0xff] %vm727_vm0, %v1660_v61  ;;  %v793_v3 = vadd.f32 %v792_v55, %v791_v59  ;;  %v960_v10 = vsel %vm727_vm0, %v901_v58, 0.0  ;;  %v968_v55 = vsel %vm727_vm0, %v905_v20, 0.0  ;;  %v804_v58 = vsel %vm727_vm0, %v1644_v56, 0.0 }
 0x146   :  { %v566_v63 = vpop.f32.mrf.mxu0  ;;  %v678_v0 = vpop.f32.mrf.mxu1  ;;  %v907_v28 = vmul.f32 %v1658_v60, %v1658_v60  ;;  %v970_v56 = vsel %vm727_vm0, %v906_v42, 0.0 }
 0x147   :  { %v794_v0 = vsel %vm727_vm0, %v1574_v36, 0.0  ;;  %v959_v36 = vadd.f32 %v958_v32, %v957_v2  ;;  %v806_v32 = vsel %vm727_vm0, %v1658_v60, 0.0 }
 0x148   :  { %v1680_v4 = vpop.f32.mrf.mxu0  ;;  %v1682_v5 = vpop.f32.mrf.mxu1 }
 0x149   :  { %742 = vst.msk [vmem:[%s2068_s2 + $0x70] sm:$0xff] %vm727_vm0, %v1680_v4  ;;  %770 = vst.msk [vmem:[%s2068_s2 + $0x150] sm:$0xff] %vm727_vm0, %v1682_v5  ;;  %v961_v19 = vadd.f32 %v960_v10, %v959_v36  ;;  %v808_v8 = vsel %vm727_vm0, %v1680_v4, 0.0 }
 0x14a   :  { %v571_v12 = vpop.f32.mrf.mxu0  ;;  %v683_v14 = vpop.f32.mrf.mxu1 }
 0x14b   :  { %v795_v12 = vadd.f32 %v794_v0, %v793_v3  ;;  %v963_v44 = vadd.f32 %v962_v40, %v961_v19  ;;  %v908_v0 = vmul.f32 %v1680_v4, %v1680_v4 }
 0x14c   :  { %v1707_v26 = vpop.f32.mrf.mxu0  ;;  %v1709_v27 = vpop.f32.mrf.mxu1 }
 0x14d   :  { %743 = vst.msk [vmem:[%s2068_s2 + $0x78] sm:$0xff] %vm727_vm0, %v1707_v26  ;;  %771 = vst.msk [vmem:[%s2068_s2 + $0x158] sm:$0xff] %vm727_vm0, %v1709_v27  ;;  %v797_v22 = vadd.f32 %v796_v11, %v795_v12  ;;  %v965_v43 = vadd.f32 %v964_v31, %v963_v44  ;;  %v972_v11 = vsel %vm727_vm0, %v907_v28, 0.0  ;;  %v909_v36 = vmul.f32 %v1707_v26, %v1707_v26 }
 0x14e   :  { %v574_v38 = vpop.f32.mrf.mxu0  ;;  %v686_v39 = vpop.f32.mrf.mxu1  ;;  %v974_v4 = vsel %vm727_vm0, %v908_v0, 0.0  ;;  %v810_v40 = vsel %vm727_vm0, %v1707_v26, 0.0 }
 0x14f   :  { %v799_v35 = vadd.f32 %v798_v16, %v797_v22  ;;  %v967_v52 = vadd.f32 %v966_v48, %v965_v43 }
 0x150   :  { %v1731_v50 = vpop.f32.mrf.mxu0  ;;  %v1733_v51 = vpop.f32.mrf.mxu1 }
 0x151   :  { %744 = vst.msk [vmem:[%s2068_s2 + $0x80] sm:$0xff] %vm727_vm0, %v1731_v50  ;;  %772 = vst.msk [vmem:[%s2068_s2 + $0x160] sm:$0xff] %vm727_vm0, %v1733_v51  ;;  %v801_v46 = vadd.f32 %v800_v34, %v799_v35  ;;  %v969_v1 = vadd.f32 %v968_v55, %v967_v52  ;;  %v910_v16 = vmul.f32 %v1731_v50, %v1731_v50  ;;  %v976_v34 = vsel %vm727_vm0, %v909_v36, 0.0 }
 0x152   :  { %v579_v62 = vpop.f32.mrf.mxu0  ;;  %v691_v63 = vpop.f32.mrf.mxu1  ;;  %v812_v20 = vsel %vm727_vm0, %v1731_v50, 0.0 }
 0x153   :  { %v803_v59 = vadd.f32 %v802_v24, %v801_v46  ;;  %v971_v60 = vadd.f32 %v970_v56, %v969_v1  ;;  %v978_v50 = vsel %vm727_vm0, %v910_v16, 0.0 }
 0x154   :  { %v1755_v6 = vpop.f32.mrf.mxu0  ;;  %v1757_v7 = vpop.f32.mrf.mxu1 }
 0x155   :  { %745 = vst.msk [vmem:[%s2068_s2 + $0x88] sm:$0xff] %vm727_vm0, %v1755_v6  ;;  %773 = vst.msk [vmem:[%s2068_s2 + $0x168] sm:$0xff] %vm727_vm0, %v1757_v7  ;;  %v805_v2 = vadd.f32 %v804_v58, %v803_v59  ;;  %v973_v18 = vadd.f32 %v972_v11, %v971_v60  ;;  %v911_v44 = vmul.f32 %v1755_v6, %v1755_v6  ;;  %v814_v48 = vsel %vm727_vm0, %v1755_v6, 0.0 }
 0x156   :  { %v582_v14 = vpop.f32.mrf.mxu0  ;;  %v694_v15 = vpop.f32.mrf.mxu1 }
 0x157   :  { %v807_v12 = vadd.f32 %v806_v32, %v805_v2  ;;  %v975_v26 = vadd.f32 %v974_v4, %v973_v18  ;;  %v980_v58 = vsel %vm727_vm0, %v911_v44, 0.0 }
 0x158   :  { %v1779_v23 = vpop.f32.mrf.mxu0  ;;  %v1781_v30 = vpop.f32.mrf.mxu1 }
 0x159   :  { %746 = vst.msk [vmem:[%s2068_s2 + $0x90] sm:$0xff] %vm727_vm0, %v1779_v23  ;;  %774 = vst.msk [vmem:[%s2068_s2 + $0x170] sm:$0xff] %vm727_vm0, %v1781_v30  ;;  %v809_v19 = vadd.f32 %v808_v8, %v807_v12  ;;  %v912_v24 = vmul.f32 %v1779_v23, %v1779_v23  ;;  %v977_v42 = vadd.f32 %v976_v34, %v975_v26  ;;  %v816_v28 = vsel %vm727_vm0, %v1779_v23, 0.0 }
 0x15a   :  { %v587_v38 = vpop.f32.mrf.mxu0  ;;  %v699_v39 = vpop.f32.mrf.mxu1 }
 0x15b   :  { %v811_v35 = vadd.f32 %v810_v40, %v809_v19  ;;  %v979_v6 = vadd.f32 %v978_v50, %v977_v42  ;;  %v982_v56 = vsel %vm727_vm0, %v912_v24, 0.0 }
 0x15c   :  { %v588_v47 = vpop.f32.mrf.mxu0  ;;  %v1803_v54 = vpop.f32.mrf.mxu1 }
 0x15d   :  { %747 = vst.msk [vmem:[%s2068_s2 + $0x98] sm:$0xff] %vm727_vm0, %v588_v47  ;;  %775 = vst.msk [vmem:[%s2068_s2 + $0x178] sm:$0xff] %vm727_vm0, %v1803_v54  ;;  %v813_v43 = vadd.f32 %v812_v20, %v811_v35  ;;  %v913_v52 = vmul.f32 %v588_v47, %v588_v47  ;;  %v818_v23 = vsel %vm727_vm0, %v588_v47, 0.0  ;;  %v981_v0 = vadd.f32 %v980_v58, %v979_v6 }
 0x15e   :  { %v590_v62 = vpop.f32.mrf.mxu0  ;;  %v702_v63 = vpop.f32.mrf.mxu1 }
 0x15f   :  { %v815_v59 = vadd.f32 %v814_v48, %v813_v43  ;;  %v984_v8 = vsel %vm727_vm0, %v913_v52, 0.0  ;;  %v983_v47 = vadd.f32 %v982_v56, %v981_v0 }
 0x160   :  { %v593_v3 = vpop.f32.mrf.mxu0  ;;  %v1824_v10 = vpop.f32.mrf.mxu1 }
 0x161   :  { %748 = vst.msk [vmem:[%s2068_s2 + $0xa0] sm:$0xff] %vm727_vm0, %v593_v3  ;;  %776 = vst.msk [vmem:[%s2068_s2 + $0x180] sm:$0xff] %vm727_vm0, %v1824_v10  ;;  %v914_v32 = vmul.f32 %v593_v3, %v593_v3  ;;  %v817_v1 = vadd.f32 %v816_v28, %v815_v59  ;;  %v820_v36 = vsel %vm727_vm0, %v593_v3, 0.0  ;;  %v985_v16 = vadd.f32 %v984_v8, %v983_v47 }
 0x162   :  { %v595_v14 = vpop.f32.mrf.mxu0  ;;  %v707_v15 = vpop.f32.mrf.mxu1 }
 0x163   :  { %v819_v12 = vadd.f32 %v818_v23, %v817_v1  ;;  %v986_v4 = vsel %vm727_vm0, %v914_v32, 0.0 }
 0x164   :  { %v596_v22 = vpop.f32.mrf.mxu0  ;;  %v1845_v31 = vpop.f32.mrf.mxu1 }
 0x165   :  { %749 = vst.msk [vmem:[%s2068_s2 + $0xa8] sm:$0xff] %vm727_vm0, %v596_v22  ;;  %777 = vst.msk [vmem:[%s2068_s2 + $0x188] sm:$0xff] %vm727_vm0, %v1845_v31  ;;  %v915_v60 = vmul.f32 %v596_v22, %v596_v22  ;;  %v822_v3 = vsel %vm727_vm0, %v596_v22, 0.0  ;;  %v821_v18 = vadd.f32 %v820_v36, %v819_v12  ;;  %v987_v22 = vadd.f32 %v986_v4, %v985_v16 }
 0x166   :  { %v598_v38 = vpop.f32.mrf.mxu0  ;;  %v710_v39 = vpop.f32.mrf.mxu1  ;;  %v922_v16 = vmul.f32 %v1478_v9, %v1478_v9 }
 0x167   :  { %v988_v20 = vsel %vm727_vm0, %v915_v60, 0.0  ;;  %v823_v35 = vadd.f32 %v822_v3, %v821_v18 }
 0x168   :  { %v601_v46 = vpop.f32.mrf.mxu0  ;;  %v1866_v55 = vpop.f32.mrf.mxu1  ;;  %v989_v42 = vadd.f32 %v988_v20, %v987_v22  ;;  %v836_v22 = vsel %vm727_vm0, %v1478_v9, 0.0  ;;  %v840_v9 = vsel %vm727_vm0, %v1506_v17, 0.0 }
 0x169   :  { %750 = vst.msk [vmem:[%s2068_s2 + $0xb0] sm:$0xff] %vm727_vm0, %v601_v46  ;;  %778 = vst.msk [vmem:[%s2068_s2 + $0x190] sm:$0xff] %vm727_vm0, %v1866_v55  ;;  %v916_v40 = vmul.f32 %v601_v46, %v601_v46  ;;  %v824_v44 = vsel %vm727_vm0, %v601_v46, 0.0 }
 0x16a   :  { %v603_v62 = vpop.f32.mrf.mxu0  ;;  %v715_v63 = vpop.f32.mrf.mxu1  ;;  %v825_v43 = vadd.f32 %v824_v44, %v823_v35  ;;  %v923_v35 = vmul.f32 %v1492_v13, %v1492_v13 }
 0x16b   :  { %v990_v50 = vsel %vm727_vm0, %v916_v40, 0.0 }
 0x16c   :  { %v604_v2 = vpop.f32.mrf.mxu0  ;;  %v1882_v11 = vpop.f32.mrf.mxu1  ;;  %v991_v59 = vadd.f32 %v990_v50, %v989_v42  ;;  %v924_v42 = vmul.f32 %v1506_v17, %v1506_v17  ;;  %v844_v17 = vsel %vm727_vm0, %v1534_v25, 0.0 }
 0x16d   :  { %751 = vst.msk [vmem:[%s2068_s2 + $0xb8] sm:$0xff] %vm727_vm0, %v604_v2  ;;  %779 = vst.msk [vmem:[%s2068_s2 + $0x198] sm:$0xff] %vm727_vm0, %v1882_v11  ;;  %v917_v26 = vmul.f32 %v604_v2, %v604_v2  ;;  %v826_v48 = vsel %vm727_vm0, %v604_v2, 0.0 }
 0x16e   :  { %v606_v14 = vpop.f32.mrf.mxu0  ;;  %v718_v15 = vpop.f32.mrf.mxu1  ;;  %v827_v62 = vadd.f32 %v826_v48, %v825_v43  ;;  %v1002_v48 = vsel %vm727_vm0, %v922_v16, 0.0 }
 0x16f   :  { %v992_v28 = vsel %vm727_vm0, %v917_v26, 0.0 }
 0x170   :  { %v609_v19 = vpop.f32.mrf.mxu0  ;;  %v1897_v34 = vpop.f32.mrf.mxu1  ;;  %v993_v0 = vadd.f32 %v992_v28, %v991_v59  ;;  %v925_v28 = vmul.f32 %v1520_v21, %v1520_v21  ;;  %v1006_v59 = vsel %vm727_vm0, %v924_v42, 0.0 }
 0x171   :  { %752 = vst.msk [vmem:[%s2068_s2 + $0xc0] sm:$0xff] %vm727_vm0, %v609_v19  ;;  %780 = vst.msk [vmem:[%s2068_s2 + $0x1a0] sm:$0xff] %vm727_vm0, %v1897_v34  ;;  %v918_v24 = vmul.f32 %v609_v19, %v609_v19  ;;  %v828_v52 = vsel %vm727_vm0, %v609_v19, 0.0 }
 0x172   :  { %v611_v38 = vpop.f32.mrf.mxu0  ;;  %v723_v39 = vpop.f32.mrf.mxu1  ;;  %v829_v1 = vadd.f32 %v828_v52, %v827_v62  ;;  %v926_v62 = vmul.f32 %v1534_v25, %v1534_v25  ;;  %v848_v25 = vsel %vm727_vm0, %v1562_v33, 0.0 }
 0x173   :  { %v994_v23 = vsel %vm727_vm0, %v918_v24, 0.0  ;;  %v838_v24 = vsel %vm727_vm0, %v1492_v13, 0.0  ;;  %v842_v13 = vsel %vm727_vm0, %v1520_v21, 0.0  ;;  %v846_v21 = vsel %vm727_vm0, %v1548_v29, 0.0 }
 0x174   :  { %v612_v46 = vpop.f32.mrf.mxu0  ;;  %v724_v58 = vpop.f32.mrf.mxu1  ;;  %v995_v47 = vadd.f32 %v994_v23, %v993_v0  ;;  %v1008_v23 = vsel %vm727_vm0, %v925_v28, 0.0  ;;  %v935_v28 = vmul.f32 %v1660_v61, %v1660_v61 }
 0x175   :  { %753 = vst.msk [vmem:[%s2068_s2 + $0xc8] sm:$0xff] %vm727_vm0, %v612_v46  ;;  %v919_v6 = vmul.f32 %v612_v46, %v612_v46  ;;  %v830_v32 = vsel %vm727_vm0, %v612_v46, 0.0  ;;  %v1004_v58 = vsel %vm727_vm0, %v923_v35, 0.0 }
 0x176   :  { %v614_v63 = vpop.f32.mrf.mxu0  ;;  %v725_v56 = vpop.f32.mrf.mxu1  ;;  %v831_v12 = vadd.f32 %v830_v32, %v829_v1  ;;  %v927_v32 = vmul.f32 %v1548_v29, %v1548_v29  ;;  %v850_v29 = vsel %vm727_vm0, %v1576_v37, 0.0 }
 0x177   :  { %v996_v8 = vsel %vm727_vm0, %v919_v6, 0.0 }
 0x178   :  { %v617_v2 = vpop.f32.mrf.mxu0  ;;  %v997_v4 = vadd.f32 %v996_v8, %v995_v47  ;;  %v928_v8 = vmul.f32 %v1562_v33, %v1562_v33  ;;  %v1012_v47 = vsel %vm727_vm0, %v927_v32, 0.0  ;;  %v852_v33 = vsel %vm727_vm0, %v1590_v41, 0.0 }
 0x179   :  { %754 = vst.msk [vmem:[%s2068_s2 + $0xd0] sm:$0xff] %vm727_vm0, %v617_v2  ;;  %v832_v36 = vsel %vm727_vm0, %v617_v2, 0.0  ;;  %v920_v60 = vmul.f32 %v617_v2, %v617_v2  ;;  %v1010_v2 = vsel %vm727_vm0, %v926_v62, 0.0 }
 0x17a   :  { %v619_v14 = vpop.f32.mrf.mxu0  ;;  %v833_v3 = vadd.f32 %v832_v36, %v831_v12  ;;  %v929_v12 = vmul.f32 %v1576_v37, %v1576_v37  ;;  %v854_v37 = vsel %vm727_vm0, %v1604_v45, 0.0 }
 0x17b   :  { %v998_v15 = vsel %vm727_vm0, %v920_v60, 0.0 }
 0x17c   :  { %v620_v40 = vpop.f32.mrf.mxu0  ;;  %v999_v20 = vadd.f32 %v998_v15, %v997_v4  ;;  %v1014_v4 = vsel %vm727_vm0, %v928_v8, 0.0 }
 0x17d   :  { %755 = vst.msk [vmem:[%s2068_s2 + $0xd8] sm:$0xff] %vm727_vm0, %v620_v40  ;;  %v834_v18 = vsel %vm727_vm0, %v620_v40, 0.0  ;;  %v921_v19 = vmul.f32 %v620_v40, %v620_v40  ;;  %s1366_s2 = smov [#allocation5]  }
 0x17e   :  { %v835_v44 = vadd.f32 %v834_v18, %v833_v3  ;;  %v622_v26 = vpop.f32.mrf.mxu0  ;;  %v930_v3 = vmul.f32 %v1590_v41, %v1590_v41  ;;  %v1016_v18 = vsel %vm727_vm0, %v929_v12, 0.0  ;;  %v856_v41 = vsel %vm727_vm0, %v1618_v49, 0.0  ;;  %s1067_s21 = sshll.u32 %s1366_s2, 4  ;;  %s1068_s21 = int_to_ptr.vmem [resolvable:$true] %s1067_s21 }
 0x17f   :  { %v1000_v38 = vsel %vm727_vm0, %v921_v19, 0.0  ;;  %v931_v19 = vmul.f32 %v1604_v45, %v1604_v45  ;;  %v858_v45 = vsel %vm727_vm0, %v1632_v53, 0.0  ;;  %v940_v12 = vmul.f32 %v1781_v30, %v1781_v30  ;;  %s1316_s24 = scalar_lea.vmem %s1068_s21, 16  ;;  %s1320_s25 = scalar_lea.vmem %s1068_s21, 32 }
 0x180   :  { %v837_v39 = vadd.f32 %v836_v22, %v835_v44  ;;  %v1001_v50 = vadd.f32 %v1000_v38, %v999_v20  ;;  %v1018_v26 = vsel %vm727_vm0, %v930_v3, 0.0  ;;  %v932_v22 = vmul.f32 %v1618_v49, %v1618_v49  ;;  %p1317_p5 = scmp.ne.s32.totalorder %s1068_s21, %s1316_s24  ;;  %p1321_p6 = scmp.lt.s32.totalorder %s1068_s21, %s1068_s21 }
 0x181   :  { %v860_v49 = vsel %vm727_vm0, %v1646_v57, 0.0  ;;  %p1322_p7 = scmp.lt.s32.totalorder %s1320_s25, %s1316_s24 }
 0x182   :  { %v839_v43 = vadd.f32 %v838_v24, %v837_v39  ;;  %v1003_v46 = vadd.f32 %v1002_v48, %v1001_v50  ;;  %v1020_v39 = vsel %vm727_vm0, %v931_v19, 0.0  ;;  %v933_v50 = vmul.f32 %v1632_v53, %v1632_v53 }
 0x183   :  { %v1022_v42 = vsel %vm727_vm0, %v932_v22, 0.0  ;;  %v862_v53 = vsel %vm727_vm0, %v1660_v61, 0.0  ;;  %v866_v61 = vsel %vm727_vm0, %v1709_v27, 0.0  ;;  %p1323_p8 = por %p1322_p7, %p1321_p6 }
 0x184   :  { %v841_v52 = vadd.f32 %v840_v9, %v839_v43  ;;  %v1005_v6 = vadd.f32 %v1004_v58, %v1003_v46  ;;  %v934_v43 = vmul.f32 %v1646_v57, %v1646_v57  ;;  %v1024_v9 = vsel %vm727_vm0, %v933_v50, 0.0 }
 0x185   :  { %v864_v57 = vsel %vm727_vm0, %v1682_v5, 0.0  ;;  %v945_v50 = vmul.f32 %v1882_v11, %v1882_v11  ;;  %p1324_p9 = pnand %p1323_p8, %p1317_p5 }
 0x186   :  { %v843_v63 = vadd.f32 %v842_v13, %v841_v52  ;;  %v1007_v56 = vadd.f32 %v1006_v59, %v1005_v6  ;;  %v1026_v59 = vsel %vm727_vm0, %v934_v43, 0.0  ;;  %v936_v13 = vmul.f32 %v1682_v5, %v1682_v5 }
 0x187   :  { %v868_v5 = vsel %vm727_vm0, %v1733_v51, 0.0  ;;  %v884_v43 = vsel %vm727_vm0, %v1897_v34, 0.0 }
 0x188   :  { %v845_v0 = vadd.f32 %v844_v17, %v843_v63  ;;  %v1009_v1 = vadd.f32 %v1008_v23, %v1007_v56  ;;  %v1028_v56 = vsel %vm727_vm0, %v935_v28, 0.0  ;;  %v937_v23 = vmul.f32 %v1709_v27, %v1709_v27 }
 0x189   :  { %v870_v27 = vsel %vm727_vm0, %v1757_v7, 0.0 }
 0x18a   :  { %v847_v36 = vadd.f32 %v846_v21, %v845_v0  ;;  %v1011_v60 = vadd.f32 %v1010_v2, %v1009_v1  ;;  %v1030_v0 = vsel %vm727_vm0, %v936_v13, 0.0  ;;  %v938_v1 = vmul.f32 %v1733_v51, %v1733_v51 }
 0x18b   :  { %v1032_v8 = vsel %vm727_vm0, %v937_v23, 0.0  ;;  %v872_v51 = vsel %vm727_vm0, %v1781_v30, 0.0  ;;  %v876_v30 = vsel %vm727_vm0, %v1824_v10, 0.0 }
 0x18c   :  { %v1013_v14 = vadd.f32 %v1012_v47, %v1011_v60  ;;  %v849_v15 = vadd.f32 %v848_v25, %v847_v36  ;;  %v939_v36 = vmul.f32 %v1757_v7, %v1757_v7  ;;  %v1034_v25 = vsel %vm727_vm0, %v938_v1, 0.0 }
 0x18d   :  { %v874_v7 = vsel %vm727_vm0, %v1803_v54, 0.0 }
 0x18e   :  { %v851_v40 = vadd.f32 %v850_v29, %v849_v15  ;;  %v1015_v16 = vadd.f32 %v1014_v4, %v1013_v14  ;;  %v1036_v4 = vsel %vm727_vm0, %v939_v36, 0.0  ;;  %v941_v29 = vmul.f32 %v1803_v54, %v1803_v54 }
 0x18f   :  { %v878_v54 = vsel %vm727_vm0, %v1845_v31, 0.0 }
 0x190   :  { %v853_v20 = vadd.f32 %v852_v33, %v851_v40  ;;  %v1017_v44 = vadd.f32 %v1016_v18, %v1015_v16  ;;  %v1038_v16 = vsel %vm727_vm0, %v940_v12, 0.0  ;;  %v942_v18 = vmul.f32 %v1824_v10, %v1824_v10 }
 0x191   :  { %v880_v10 = vsel %vm727_vm0, %v1866_v55, 0.0 }
 0x192   :  { %v855_v35 = vadd.f32 %v854_v37, %v853_v20  ;;  %v1019_v38 = vadd.f32 %v1018_v26, %v1017_v44  ;;  %v1040_v20 = vsel %vm727_vm0, %v941_v29, 0.0  ;;  %v943_v44 = vmul.f32 %v1845_v31, %v1845_v31 }
 0x193   :  { %v1042_v22 = vsel %vm727_vm0, %v942_v18, 0.0 }
 0x194   :  { %v857_v48 = vadd.f32 %v856_v41, %v855_v35  ;;  %v1021_v24 = vadd.f32 %v1020_v39, %v1019_v38  ;;  %v944_v35 = vmul.f32 %v1866_v55, %v1866_v55  ;;  %v1044_v41 = vsel %vm727_vm0, %v943_v44, 0.0 }
 0x195   :  { %v1048_v55 = vsel %vm727_vm0, %v945_v50, 0.0 }
 0x196   :  { %v859_v46 = vadd.f32 %v858_v45, %v857_v48  ;;  %v1023_v58 = vadd.f32 %v1022_v42, %v1021_v24  ;;  %v946_v48 = vmul.f32 %v1897_v34, %v1897_v34  ;;  %v1046_v31 = vsel %vm727_vm0, %v944_v35, 0.0 }
 0x197   :  { %v882_v45 = vsel %vm727_vm0, %v1882_v11, 0.0 }
 0x198   :  { %v861_v52 = vadd.f32 %v860_v49, %v859_v46  ;;  %v1025_v6 = vadd.f32 %v1024_v9, %v1023_v58  ;;  %v1050_v9 = vsel %vm727_vm0, %v946_v48, 0.0 }
 0x19a   :  { %v863_v62 = vadd.f32 %v862_v53, %v861_v52  ;;  %v1027_v63 = vadd.f32 %v1026_v59, %v1025_v6 }
 0x19c   :  { %v1029_v17 = vadd.f32 %v1028_v56, %v1027_v63  ;;  %v865_v32 = vadd.f32 %v864_v57, %v863_v62 }
 0x19e   :  { %v1031_v2 = vadd.f32 %v1030_v0, %v1029_v17  ;;  %v867_v21 = vadd.f32 %v866_v61, %v865_v32 }
 0x1a0   :  { %v1033_v60 = vadd.f32 %v1032_v8, %v1031_v2  ;;  %v869_v47 = vadd.f32 %v868_v5, %v867_v21 }
 0x1a2   :  { %v1035_v14 = vadd.f32 %v1034_v25, %v1033_v60  ;;  %v871_v15 = vadd.f32 %v870_v27, %v869_v47 }
 0x1a4   :  { %v1037_v3 = vadd.f32 %v1036_v4, %v1035_v14  ;;  %v873_v40 = vadd.f32 %v872_v51, %v871_v15 }
 0x1a6   :  { %v1039_v33 = vadd.f32 %v1038_v16, %v1037_v3  ;;  %v875_v19 = vadd.f32 %v874_v7, %v873_v40 }
 0x1a8   :  { %v1041_v26 = vadd.f32 %v1040_v20, %v1039_v33  ;;  %v877_v37 = vadd.f32 %v876_v30, %v875_v19 }
 0x1aa   :  { %v1043_v38 = vadd.f32 %v1042_v22, %v1041_v26  ;;  %v879_v39 = vadd.f32 %v878_v54, %v877_v37 }
 0x1ac   :  { %v1045_v24 = vadd.f32 %v1044_v41, %v1043_v38  ;;  %v881_v42 = vadd.f32 %v880_v10, %v879_v39 }
 0x1ae   :  { %v1047_v46 = vadd.f32 %v1046_v31, %v1045_v24  ;;  %v883_v58 = vadd.f32 %v882_v45, %v881_v42 }
 0x1b0   :  { %v1049_v49 = vadd.f32 %v1048_v55, %v1047_v46  ;;  %v885_v28 = vadd.f32 %v884_v43, %v883_v58 }
 0x1b2   :  { %v886_v52 = vrot.slane %v885_v28, 4  ;;  %v1051_v6 = vadd.f32 %v1050_v9, %v1049_v49 }
 0x1b4   :  { %v887_v59 = vadd.f32 %v886_v52, %v885_v28  ;;  %v1052_v53 = vrot.slane %v1051_v6, 4 }
 0x1b6   :  { %v888_v13 = vrot.slane %v887_v59, 2  ;;  %v1053_v62 = vadd.f32 %v1052_v53, %v1051_v6 }
 0x1b8   :  { %v889_v63 = vadd.f32 %v888_v13, %v887_v59  ;;  %v1054_v56 = vrot.slane %v1053_v62, 2 }
 0x1ba   :  { %v890_v11 = vrot.slane %v889_v63, 1  ;;  %v1055_v34 = vadd.f32 %v1054_v56, %v1053_v62 }
 0x1bc   :  { %v891_v57 = vadd.f32 %v890_v11, %v889_v63  ;;  %v1056_v23 = vrot.slane %v1055_v34, 1 }
 0x1be   :  { %893 = vst.msk [vmem:[#allocation5] sm:$0x1] %vm892_vm1, %v891_v57  ;;  %v1057_v17 = vadd.f32 %v1056_v23, %v1055_v34 }
 0x1bf   :  { %1327 = shalt.err (!%p1324_p9)
}
 0x1c0   :  { %1070 = dma.vmem_to_hbm [thread:$0]  %s1068_s21, 16, %s2069_s3, [#allocation4]   ;;  %1058 = vst.msk [vmem:[#allocation6] sm:$0x1] %vm892_vm1, %v1057_v17 }
 0x1c1   :  { %s1336_s26 = scalar_lea.vmem %s1078_s23, 16  ;;  %s1340_s27 = scalar_lea.vmem %s1078_s23, 32 }
 0x1c2   :  { %p1337_p10 = scmp.ne.s32.totalorder %s1078_s23, %s1336_s26  ;;  %p1341_p11 = scmp.lt.s32.totalorder %s1078_s23, %s1078_s23 }
 0x1c3   :  { %p1342_p12 = scmp.lt.s32.totalorder %s1340_s27, %s1336_s26 }
 0x1c5   :  { %p1343_p13 = por %p1342_p12, %p1341_p11 }
 0x1c7   :  { %p1344_p0 = pnand %p1343_p13, %p1337_p10 }
 0x1c9   :  { %1347 = shalt.err (!%p1344_p0)
}
 0x1ca   :  { %1080 = dma.vmem_to_hbm [thread:$0]  %s1078_s23, 16, %s2070_s4, [#allocation7]  }
 0x1cb   :  { %1358 = dma.done.wait [#allocation4], 16  }
 0x1cc   :  { %1359 = vsyncadd [#allocation4], 4294967280 }
 0x1cd   :  { %1360 = dma.done.wait [#allocation7], 16  }
 0x1ce   :  { %1361 = vsyncadd [#allocation7], 4294967280 }
 0x1cf   :  { %1089 = vsyncpa [#allocation3], 1 }
 0x1d0   :  { %1090 = vsyncpa [#allocation4], 1 }
 0x1d1   :  { %1091 = vsyncpa [#allocation7], 1 }

</bundles_post_ra>
